<compile_context>
chip_gen: v7x
topology: tpu7x:2x2x1
jax: 0.10.0
libtpu: 0.0.40
codegen_flags: <defaults>
</compile_context>

<pallas_src>
import math

import jax
import jax.numpy as jnp
from jax.experimental import pallas as pl
from jax.experimental.pallas import tpu as pltpu

_LANE = 128
_HIDDEN = 512


def _quantile_net_kernel(state_ref, tau_ref, w1_ref, b1_ref, w2_ref, b2_ref,
                         out_ref):
    # state_ref: (TB, 1, E) bf16    tau_ref: (TB, N, E) bf16
    # w1_ref:    (E, H)     bf16    b1_ref:  (1, H)     f32
    # w2_ref:    (H, Apad)  bf16    b2_ref:  (1, Apad)  f32
    # out_ref:   (TB*N, Apad) f32   (flat, lane-dense)
    tb, n, e = tau_ref.shape

    # Broadcast multiply in f32 (portable incl. v5e), then bf16 for the MXU.
    emb = (state_ref[...].astype(jnp.float32) *
           tau_ref[...].astype(jnp.float32)).astype(jnp.bfloat16)
    emb = emb.reshape(tb * n, e)                                  # (rows, E)

    # Linear(E, 512) + ReLU  (bf16 MXU inputs, f32 accumulate / elementwise).
    h = jnp.dot(emb, w1_ref[...], preferred_element_type=jnp.float32)
    h = jnp.maximum(h + b1_ref[...], 0.0)                         # (rows, H)

    # Linear(512, Apad) -- 128-lane slab, unmasked full-width stores.
    q = jnp.dot(h.astype(jnp.bfloat16), w2_ref[...],
                preferred_element_type=jnp.float32)
    out_ref[...] = (q + b2_ref[...]).astype(out_ref.dtype)        # (rows, Apad)


def prepare_params(params):
    """One-time conversion of PyTorch-layout params for the kernel.

    Transposes to (in, out), zero-pads num_actions to a full 128-lane slab,
    and casts weights to bf16.  Done once at model setup, NOT per forward.
    """
    W1, b1, W2, b2 = params["W1"], params["b1"], params["W2"], params["b2"]
    H, E = W1.shape
    A = W2.shape[0]
    a_pad = max(_LANE, ((A + _LANE - 1) // _LANE) * _LANE)

    w1_t = jnp.asarray(W1.T, jnp.bfloat16)                        # (E, H)
    w2_t = jnp.zeros((H, a_pad), jnp.bfloat16)
    w2_t = w2_t.at[:, :A].set(W2.T.astype(jnp.bfloat16))          # (H, Apad)
    b1_r = b1.reshape(1, H).astype(jnp.float32)                   # (1, H)
    b2_r = jnp.zeros((1, a_pad), jnp.float32).at[:, :A].set(b2)   # (1, Apad)

    return {"w1": w1_t, "b1": b1_r, "w2": w2_t, "b2": b2_r,
            "num_actions": A}


def _vmem_capacity_bytes():
    try:
        return int(pltpu.get_tpu_info().vmem_capacity_bytes)
    except Exception:
        return 64 * 1024 * 1024      # conservative per-TC figure (v7x)


def _plan_tiles(batch, n, e, h, a_pad):
    """Generation-aware batch tile (tb) and vmem_limit_bytes.

    Targets ~1K-4K MXU rows per grid step, bounded by a VMEM budget covering
    double-buffered tau/out tiles, the resident weights and f32 intermediates;
    capped so the grid keeps >= 2 steps (lets the 'parallel' axis split across
    v7x's two TensorCores).
    """
    cap = _vmem_capacity_bytes()
    vmem_limit = (3 * cap) // 4          # 48 MiB on v7x (64 MiB), 96 MiB on v5e/v6e

    weight_bytes = 2 * (e * h * 2 + h * a_pad * 2) + 4 * (h + a_pad)
    per_row = (
        2 * e * 2            # tau tile, double-buffered bf16
        + e * 4 + e * 2      # f32 product temp + bf16 emb
        + h * 4              # f32 hidden activations
        + a_pad * 4          # f32 q
        + 2 * a_pad * 4      # out tile, double-buffered f32
    )
    budget = max(vmem_limit - weight_bytes - (6 << 20), per_row * 8)
    rows = max(8, min(4096, budget // per_row))

    tb = max(1, rows // n)
    # Keep >= 2 grid steps so both v7x TensorCores get work.
    tb = min(tb, max(1, pl.cdiv(batch, 2)), batch)

    # Mosaic layout rule: output block's sublane dim (tb*n) must be a multiple
    # of 8 unless the block spans the whole (B*N) axis.
    if (tb * n) % 8 != 0 and tb < batch:
        g = 8 // math.gcd(n, 8)          # smallest tb granularity s.t. tb*n % 8 == 0
        tb = max(g, (tb // g) * g)
        if tb > batch:
            tb = batch                   # single full-span block: always legal
    return tb, int(vmem_limit)


def quantile_network_forward(state_embeddings, tau_embeddings, prepared):
    B, E = state_embeddings.shape
    _, N, _ = tau_embeddings.shape
    w1, b1, w2, b2 = (prepared["w1"], prepared["b1"],
                      prepared["w2"], prepared["b2"])
    H = w1.shape[1]
    a_pad = w2.shape[1]
    A = prepared["num_actions"]

    # Stream activations as bf16.  Upstream embedding nets should produce bf16
    # directly (these casts are then no-ops); they exist so f32 callers work.
    state3 = state_embeddings.reshape(B, 1, E).astype(jnp.bfloat16)
    tau = tau_embeddings.astype(jnp.bfloat16)

    tb, vmem_limit = _plan_tiles(B, N, E, H, a_pad)
    grid = (pl.cdiv(B, tb),)
    rows = tb * N

    cost = pl.CostEstimate(
        flops=int(2 * B * N * E * H + 2 * B * N * H * a_pad),
        transcendentals=0,
        bytes_accessed=int(
            state3.size * 2 + tau.size * 2 + w1.size * 2 + w2.size * 2
            + b1.size * 4 + b2.size * 4 + B * N * a_pad * 4),
    )

    out_pad = pl.pallas_call(
        _quantile_net_kernel,
        out_shape=jax.ShapeDtypeStruct((B * N, a_pad), jnp.float32),
        grid_spec=pltpu.PrefetchScalarGridSpec(
            num_scalar_prefetch=0,
            grid=grid,
            in_specs=[
                pl.BlockSpec((tb, 1, E), lambda i: (i, 0, 0)),    # state (bf16)
                pl.BlockSpec((tb, N, E), lambda i: (i, 0, 0)),    # tau   (bf16)
                pl.BlockSpec((E, H), lambda i: (0, 0)),           # W1 (resident)
                pl.BlockSpec((1, H), lambda i: (0, 0)),           # b1 (resident)
                pl.BlockSpec((H, a_pad), lambda i: (0, 0)),       # W2 (resident)
                pl.BlockSpec((1, a_pad), lambda i: (0, 0)),       # b2 (resident)
            ],
            # Flat 2-D lane-dense output: unmasked full-width stores, no
            # in-kernel 3-D reshape of the result.
            out_specs=pl.BlockSpec((rows, a_pad), lambda i: (i, 0)),
        ),
        compiler_params=pltpu.CompilerParams(
            dimension_semantics=("parallel",),
            vmem_limit_bytes=vmem_limit,
        ),
        cost_estimate=cost,
    )(state3, tau, w1, b1, w2, b2)

    # Slice the 128-lane padded slab to the real action count; reshape in XLA.
    return out_pad[:, :A].reshape(B, N, A)


def init_params(key, embedding_dim, hidden, num_actions):
    """Deterministic init matching nn.Linear's default U(-1/sqrt(fan_in), +)."""
    k1, k2, k3, k4 = jax.random.split(key, 4)
    bound1 = 1.0 / math.sqrt(embedding_dim)
    bound2 = 1.0 / math.sqrt(hidden)
    return {
        "W1": jax.random.uniform(k1, (hidden, embedding_dim), jnp.float32,
                                 -bound1, bound1),
        "b1": jax.random.uniform(k2, (hidden,), jnp.float32, -bound1, bound1),
        "W2": jax.random.uniform(k3, (num_actions, hidden), jnp.float32,
                                 -bound2, bound2),
        "b2": jax.random.uniform(k4, (num_actions,), jnp.float32,
                                 -bound2, bound2),
    }


def reference_forward(state_embeddings, tau_embeddings, params):
    B, E = state_embeddings.shape
    _, N, _ = tau_embeddings.shape
    emb = (state_embeddings[:, None, :] * tau_embeddings).reshape(B * N, E)
    h = jnp.maximum(emb @ params["W1"].T + params["b1"], 0.0)
    q = h @ params["W2"].T + params["b2"]
    return q.reshape(B, N, -1)


# TODO(synk): dueling_net / noisy_net variants of QuantileNetwork are not
# implemented (module default is dueling_net=False, noisy_net=False).

if __name__ == "__main__":
    # Small synthetic shapes consistent with the module's forward contract.
    B = 2            # batch
    N = 8            # number of quantile fractions
    E = 128          # embedding_dim (module default is 7*7*64; small here)
    H = _HIDDEN      # fixed hidden size in the module
    A = 8            # num_actions

    key = jax.random.PRNGKey(0)
    k_state, k_tau, k_params = jax.random.split(key, 3)

    state_embeddings = jax.random.normal(k_state, (B, E), jnp.float32)
    tau_embeddings = jax.random.normal(k_tau, (B, N, E), jnp.float32)
    params = init_params(k_params, E, H, A)

    prepared = prepare_params(params)   # one-time: transpose + pad + bf16 cast

    out = quantile_network_forward(state_embeddings, tau_embeddings, prepared)
    out = jax.block_until_ready(out)

    ref = reference_forward(state_embeddings, tau_embeddings, params)
    assert out.shape == (B, N, A), out.shape
    # bf16 activations/weights on the MXU (f32 accumulation) -> loosened
    # tolerance vs the f32 reference; deliberate trade-off for an RL head.
    assert jnp.allclose(out, ref, atol=5e-2, rtol=5e-2), "mismatch vs reference"

    print("KERNEL_OK")
</pallas_src>

<mosaic_0001>
module attributes {stable_mosaic.version = 11 : i64} {
  func.func @_quantile_net_kernel(%arg0: i32, %arg1: memref<1x1x128xbf16, #tpu.memory_space<vmem>>, %arg2: memref<1x8x128xbf16, #tpu.memory_space<vmem>>, %arg3: memref<128x512xbf16, #tpu.memory_space<vmem>>, %arg4: memref<1x512xf32, #tpu.memory_space<vmem>>, %arg5: memref<512x128xbf16, #tpu.memory_space<vmem>>, %arg6: memref<1x128xf32, #tpu.memory_space<vmem>>, %arg7: memref<8x128xf32, #tpu.memory_space<vmem>>) attributes {dimension_semantics = [#tpu.dimension_semantics<parallel>], iteration_bounds = array<i64: 2>, scalar_prefetch = 0 : i64, scratch_operands = 0 : i64, tpu.core_type = #tpu.core_type<tc>, window_params = [{transform_indices = @transform_0, window_bounds = array<i64: 1, 1, 128>}, {transform_indices = @transform_1, window_bounds = array<i64: 1, 8, 128>}, {pipeline_mode = #tpu.pipeline_mode<synchronous>, transform_indices = @transform_2, window_bounds = array<i64: 128, 512>}, {pipeline_mode = #tpu.pipeline_mode<synchronous>, transform_indices = @transform_3, window_bounds = array<i64: 1, 512>}, {pipeline_mode = #tpu.pipeline_mode<synchronous>, transform_indices = @transform_4, window_bounds = array<i64: 512, 128>}, {pipeline_mode = #tpu.pipeline_mode<synchronous>, transform_indices = @transform_5, window_bounds = array<i64: 1, 128>}, {transform_indices = @transform_6, window_bounds = array<i64: 8, 128>}]} {
    %c0 = arith.constant 0 : index
    %c0_0 = arith.constant 0 : index
    %c0_1 = arith.constant 0 : index
    %0 = vector.load %arg1[%c0, %c0_0, %c0_1] : memref<1x1x128xbf16, #tpu.memory_space<vmem>>, vector<1x1x128xbf16>
    %1 = arith.extf %0 : vector<1x1x128xbf16> to vector<1x1x128xf32>
    %c0_2 = arith.constant 0 : index
    %c0_3 = arith.constant 0 : index
    %c0_4 = arith.constant 0 : index
    %2 = vector.load %arg2[%c0_2, %c0_3, %c0_4] : memref<1x8x128xbf16, #tpu.memory_space<vmem>>, vector<1x8x128xbf16>
    %3 = arith.extf %2 : vector<1x8x128xbf16> to vector<1x8x128xf32>
    %4 = vector.broadcast %1 : vector<1x1x128xf32> to vector<1x8x128xf32>
    %5 = arith.mulf %4, %3 : vector<1x8x128xf32>
    %6 = arith.truncf %5 : vector<1x8x128xf32> to vector<1x8x128xbf16>
    %7 = vector.shape_cast %6 : vector<1x8x128xbf16> to vector<8x128xbf16>
    %c0_5 = arith.constant 0 : index
    %c0_6 = arith.constant 0 : index
    %8 = vector.load %arg3[%c0_5, %c0_6] : memref<128x512xbf16, #tpu.memory_space<vmem>>, vector<128x512xbf16>
    %cst = arith.constant dense<0.000000e+00> : vector<8x512xf32>
    %9 = tpu.matmul %7, %8, %cst {dimension_numbers = #tpu.dot_dimension_numbers<[1], [0], [0], [1], [0, 0, 1, 1], [], []>} : vector<8x128xbf16>, vector<128x512xbf16>, vector<8x512xf32> -> vector<8x512xf32>
    %c0_7 = arith.constant 0 : index
    %c0_8 = arith.constant 0 : index
    %10 = vector.load %arg4[%c0_7, %c0_8] : memref<1x512xf32, #tpu.memory_space<vmem>>, vector<1x512xf32>
    %11 = vector.broadcast %10 : vector<1x512xf32> to vector<8x512xf32>
    %12 = arith.addf %9, %11 : vector<8x512xf32>
    %cst_9 = arith.constant 0.000000e+00 : f32
    %13 = vector.broadcast %cst_9 : f32 to vector<8x512xf32>
    %14 = arith.maximumf %12, %13 : vector<8x512xf32>
    %15 = arith.truncf %14 : vector<8x512xf32> to vector<8x512xbf16>
    %c0_10 = arith.constant 0 : index
    %c0_11 = arith.constant 0 : index
    %16 = vector.load %arg5[%c0_10, %c0_11] : memref<512x128xbf16, #tpu.memory_space<vmem>>, vector<512x128xbf16>
    %cst_12 = arith.constant dense<0.000000e+00> : vector<8x128xf32>
    %17 = tpu.matmul %15, %16, %cst_12 {dimension_numbers = #tpu.dot_dimension_numbers<[1], [0], [0], [1], [0, 0, 1, 1], [], []>} : vector<8x512xbf16>, vector<512x128xbf16>, vector<8x128xf32> -> vector<8x128xf32>
    %c0_13 = arith.constant 0 : index
    %c0_14 = arith.constant 0 : index
    %18 = vector.load %arg6[%c0_13, %c0_14] : memref<1x128xf32, #tpu.memory_space<vmem>>, vector<1x128xf32>
    %19 = vector.broadcast %18 : vector<1x128xf32> to vector<8x128xf32>
    %20 = arith.addf %17, %19 : vector<8x128xf32>
    %c0_15 = arith.constant 0 : index
    %c0_16 = arith.constant 0 : index
    %21 = vector.load %arg7[%c0_15, %c0_16] : memref<8x128xf32, #tpu.memory_space<vmem>>, vector<8x128xf32>
    tpu.vector_store %arg7[%c0_15, %c0_16], %20 {strides = array<i32>} : memref<8x128xf32, #tpu.memory_space<vmem>>, vector<8x128xf32>,
    return
  }
  func.func @transform_0(%arg0: i32) -> (i32, i32, i32) {
    %c0_i32 = arith.constant 0 : i32
    %c0_i32_0 = arith.constant 0 : i32
    %c0_i32_1 = arith.constant 0 : i32
    return %arg0, %c0_i32, %c0_i32_0 : i32, i32, i32
  }
  func.func @transform_1(%arg0: i32) -> (i32, i32, i32) {
    %c0_i32 = arith.constant 0 : i32
    %c0_i32_0 = arith.constant 0 : i32
    %c0_i32_1 = arith.constant 0 : i32
    return %arg0, %c0_i32, %c0_i32_0 : i32, i32, i32
  }
  func.func @transform_2(%arg0: i32) -> (i32, i32) {
    %c0_i32 = arith.constant 0 : i32
    %c0_i32_0 = arith.constant 0 : i32
    %c0_i32_1 = arith.constant 0 : i32
    return %c0_i32, %c0_i32_0 : i32, i32
  }
  func.func @transform_3(%arg0: i32) -> (i32, i32) {
    %c0_i32 = arith.constant 0 : i32
    %c0_i32_0 = arith.constant 0 : i32
    %c0_i32_1 = arith.constant 0 : i32
    return %c0_i32, %c0_i32_0 : i32, i32
  }
  func.func @transform_4(%arg0: i32) -> (i32, i32) {
    %c0_i32 = arith.constant 0 : i32
    %c0_i32_0 = arith.constant 0 : i32
    %c0_i32_1 = arith.constant 0 : i32
    return %c0_i32, %c0_i32_0 : i32, i32
  }
  func.func @transform_5(%arg0: i32) -> (i32, i32) {
    %c0_i32 = arith.constant 0 : i32
    %c0_i32_0 = arith.constant 0 : i32
    %c0_i32_1 = arith.constant 0 : i32
    return %c0_i32, %c0_i32_0 : i32, i32
  }
  func.func @transform_6(%arg0: i32) -> (i32, i32) {
    %c0_i32 = arith.constant 0 : i32
    %c0_i32_0 = arith.constant 0 : i32
    return %arg0, %c0_i32 : i32, i32
  }
}

</mosaic_0001>

<bundles_post_ra>
// kernel: tpu_custom_call.1
= control target key start
LH: loop header
LB: loop body
LE: loop exit
PB: predicated region body
PF: predicated region fallthrough
CT: control target
= control target key end

     0   :  { %11 = vsyncpa [#allocation3], 0  ;;  %s1814_s0 = inlined_call_operand.vmem [shape: bf16[2,1,128], index: 0, kind: input, shape index: {}]   ;;  %s1815_s1 = inlined_call_operand.hbm [shape: bf16[2,8,128], index: 1, kind: input, shape index: {}]   ;;  %s1816_s2 = inlined_call_operand.hbm [shape: bf16[128,512], index: 2, kind: input, shape index: {}]   ;;  %s1817_s3 = inlined_call_operand.vmem [shape: f32[1,512], index: 3, kind: input, shape index: {}]   ;;  %s1818_s4 = inlined_call_operand.hbm [shape: bf16[512,128], index: 4, kind: input, shape index: {}]   ;;  %s1819_s5 = inlined_call_operand.vmem [shape: f32[1,128], index: 5, kind: input, shape index: {}]   ;;  %s1820_s6 = inlined_call_operand.hbm [shape: f32[16,128], index: 6, kind: output, shape index: {}]  }
   0x1   :  { %13 = vsyncpa [#allocation3 + $0x1], 0 }
   0x2   :  { %14 = vsyncpa [#allocation6], 0 }
   0x3   :  { %15 = vsyncpa [#allocation4], 0 }
   0x4   :  { %17 = vsyncpa [#allocation4 + $0x1], 0  ;;  %s1560_s21 = smov 0   ;;  %s1562_s22 = smov 0  }
   0x5   :  { %s1564_s23 = smov 0   ;;  %s1566_s24 = smov 0  }
   0x6 LB: > { %s1581_s25 = sadd.s32 4294967295, %s1514_s24   ;;  %s1081_s26 = sadd.s32 4294967294, %s1514_s24   ;;  %s1514_s24 = sphi %s1566_s24, %s1840_s24   ;;  %s1510_s23 = sphi %s1564_s23, %s1839_s23   ;;  %s1506_s22 = sphi %s1562_s22, %s1838_s22   ;;  %s1502_s21 = sphi %s1560_s21, %s1837_s21  }
   0x7   : > { %p69_p0 = scmp.ne.s32.totalorder %s1506_s22, %s1502_s21  ;;  %p1821_p1 = scmp.eq.s32.totalorder %s1581_s25, 0 }
   0x8   : > { %p183_p3 = scmp.eq.s32.totalorder %s1081_s26, 1  ;;  %p1082_p5 = scmp.ge.s32.totalorder %s1514_s24, 1 }
   0x9   : > { %p1590_p4 = por %p1821_p1, %p69_p0  ;;  %p190_p7 = scmp.lt.s32.totalorder %s1514_s24, 3 }
   0xa   : > { %p1595_p6 = por %p183_p3, %p69_p0  ;;  %s1516_s30 = smov [#allocation5]  }
   0xb   : > { %s1824_s27 = scalar_select %p1590_p4, 1, 0 }
   0xc   : > { %s1825_s28 = scalar_select %p1595_p6, 1, 0 }
   0xd   : > { %p1600_p8 = pnand %p1082_p5, %p190_p7  ;;  %s202_s7 = sshll.u32 %s1516_s30, 4  ;;  %s1604_s7 = int_to_ptr.vmem [resolvable:$true] %s202_s7 }
   0xe   : > { %s1517_s9 = smov [#allocation7]   ;;  %s1358_s13 = scalar_lea.hbm %s1816_s2, 4096 }
   0xf   : > { %p1218_p9 = pneg %p1600_p8  ;;  %s218_s10 = sshll.u32 %s1517_s9, 4  ;;  %s1615_s10 = int_to_ptr.vmem [resolvable:$true] %s218_s10 }
  0x10   : > { %p1359_p12 = scmp.ne.s32.totalorder %s1816_s2, %s1358_s13  ;;  %p1365_p5 = scmp.lt.u32.totalorder %s1358_s13, %s1816_s2 }
  0x11   : > { %p1611_p11 = pnand %p1218_p9, %p1821_p1 }
  0x13   : > { %p1360_p13 = pneg %p1611_p11 }
  0x15   : > { %p1361_p0 = pnand %p1360_p13, %p1359_p12 }
  0x17   : > { %p1362_p3 = pneg %p1361_p0 }
  0x19   : > { %p1367_p7 = pnand %p1365_p5, %p1362_p3 }
  0x1b   : > { %1370 = shalt.err (!%p1367_p7)
}
  0x1c   : > { %s1371_s18 = scalar_lea.vmem %s1604_s7, 4096  ;;  %p1379_p2 = scmp.lt.s32.totalorder %s1604_s7, %s1604_s7 }
  0x1d   : > { %p1372_p9 = scmp.ne.s32.totalorder %s1604_s7, %s1371_s18  ;;  %p1380_p12 = scmp.lt.s32.totalorder %s1371_s18, %s1371_s18 }
  0x1f   : > { %p1374_p10 = pnand %p1372_p9, %p1360_p13  ;;  %p1381_p0 = por %p1380_p12, %p1379_p2 }
  0x21   : > { %p1375_p1 = pneg %p1374_p10 }
  0x23   : > { %p1382_p6 = pnand %p1381_p0, %p1375_p1 }
  0x25   : > { %1385 = shalt.err (!%p1382_p6)
}
  0x26   : > { %s1518_s19 = smov 256   ;;  %s1519_s20 = smov 16  }
  0x27   : > { %1221 = dma.hbm_to_vmem [thread:$0]  (!%p1611_p11), %s1816_s2, 4096, %s1604_s7, [#allocation6], %s1518_s19, %s1518_s19, %s1519_s20  }
  0x28   : > { %s1386_s12 = scalar_lea.hbm %s1818_s4, 4096 }
  0x29   : > { %p1387_p2 = scmp.ne.s32.totalorder %s1818_s4, %s1386_s12  ;;  %p1393_p10 = scmp.lt.u32.totalorder %s1386_s12, %s1818_s4 }
  0x2b   : > { %p1389_p1 = pnand %p1387_p2, %p1360_p13 }
  0x2d   : > { %p1390_p6 = pneg %p1389_p1 }
  0x2f   : > { %p1395_p3 = pnand %p1393_p10, %p1390_p6 }
  0x31   : > { %1398 = shalt.err (!%p1395_p3)
}
  0x32   : > { %s1399_s7 = scalar_lea.vmem %s1615_s10, 4096  ;;  %p1407_p12 = scmp.lt.s32.totalorder %s1615_s10, %s1615_s10 }
  0x33   : > { %p1400_p5 = scmp.ne.s32.totalorder %s1615_s10, %s1399_s7  ;;  %p1408_p0 = scmp.lt.s32.totalorder %s1399_s7, %s1399_s7 }
  0x35   : > { %p1402_p7 = pnand %p1400_p5, %p1360_p13  ;;  %p1409_p2 = por %p1408_p0, %p1407_p12 }
  0x37   : > { %p1403_p9 = pneg %p1402_p7 }
  0x39   : > { %p1410_p1 = pnand %p1409_p2, %p1403_p9 }
  0x3b   : > { %1413 = shalt.err (!%p1410_p1)
}
  0x3c   : > { %s1520_s17 = smov 64   ;;  %s1521_s18 = smov 4  }
  0x3d   : > { %1224 = dma.hbm_to_vmem [thread:$0]  (!%p1611_p11), %s1818_s4, 4096, %s1615_s10, [#allocation6], %s1520_s17, %s1520_s17, %s1521_s18  }
  0x3e   : > { %s1670_s26 = sadd.s32 1, %s1514_s24   ;;  %s56_s9 = sadd.s32 1, %s1510_s23 }
  0x3f   : > { %s53_s30 = ssub.s32 %s1514_s24, %s1670_s26  ;;  %p63_p6 = scmp.ne.s32.totalorder %s1510_s23, %s1506_s22 }
  0x40   : > { %p54_p13 = scmp.eq.s32.totalorder %s53_s30, 0  ;;  %p64_p10 = scmp.eq.s32.totalorder %s1514_s24, 0 }
  0x41   : > { %p1828_p5 = scmp.eq.s32.totalorder %s1581_s25, 1  ;;  %p1235_p9 = scmp.lt.s32.totalorder %s1514_s24, 2 }
  0x42   : > { %s1679_s11 = scalar_select %p54_p13, %s1510_s23, %s56_s9  }
  0x43   : > { %p65_p3 = por %p64_p10, %p63_p6  ;;  %p1683_p7 = por %p1828_p5, %p63_p6 }
  0x44   : > { %s241_s8 = sand.u32 1, %s1510_s23   ;;  %s1087_s10 = sshll.u32 %s1514_s24, 6 }
  0x45   : > { %s1829_s12 = scalar_select %p1683_p7, 1, 0 }
  0x46   : > { %s1086_s13 = sshll.u32 %s241_s8, 2  ;;  %s1693_s16 = scalar_lea.hbm %s1815_s1, %s1087_s10 }
  0x47   : > { %s245_s7 = scalar_lea.vmem [#allocation2], %s1086_s13  ;;  %p1697_p11 = pnand %p1235_p9, %p65_p3 }
  0x48   : > { %s252_s17 = sshll.u32 %s245_s7, 4  ;;  %s242_s19 = scalar_lea.sflag [#allocation3], %s241_s8  ;;  %s1695_s17 = int_to_ptr.vmem [resolvable:$true] %s252_s17 }
  0x49   : > { %s1414_s20 = scalar_lea.hbm %s1693_s16, 64  ;;  %p1416_p0 = pneg %p1697_p11 }
  0x4a   : > { %p1415_p12 = scmp.ne.s32.totalorder %s1693_s16, %s1414_s20  ;;  %s1419_s13 = scalar_lea.hbm %s1815_s1, 128 }
  0x4b   : > { %p1420_p13 = scmp.lt.u32.totalorder %s1693_s16, %s1815_s1  ;;  %p1421_p6 = scmp.lt.u32.totalorder %s1419_s13, %s1414_s20 }
  0x4c   : > { %p1417_p2 = pnand %p1416_p0, %p1415_p12  ;;  %p1423_p3 = scmp.lt.u32.totalorder %s1414_s20, %s1693_s16 }
  0x4d   : > { %p1422_p10 = por %p1421_p6, %p1420_p13 }
  0x4e   : > { %p1418_p1 = pneg %p1417_p2 }
  0x4f   : > { %p1424_p5 = por %p1423_p3, %p1422_p10 }
  0x51   : > { %p1425_p9 = pnand %p1424_p5, %p1418_p1 }
  0x53   : > { %1428 = shalt.err (!%p1425_p9)
}
  0x54   : > { %s1429_s8 = scalar_lea.vmem %s1695_s17, 64  ;;  %s1522_s15 = smov [#allocation2]  }
  0x55   : > { %p1430_p12 = scmp.ne.s32.totalorder %s1695_s17, %s1429_s8  ;;  %s1434_s7 = sshll.u32 %s1522_s15, 4  ;;  %s1435_s7 = int_to_ptr.vmem [resolvable:$false] %s1434_s7 }
  0x56   : > { %s1436_s30 = scalar_lea.vmem %s1435_s7, 128  ;;  %p1437_p4 = scmp.lt.s32.totalorder %s1695_s17, %s1435_s7 }
  0x57   : > { %p1432_p2 = pnand %p1430_p12, %p1416_p0  ;;  %p1438_p13 = scmp.lt.s32.totalorder %s1436_s30, %s1429_s8 }
  0x59   : > { %p1433_p7 = pneg %p1432_p2  ;;  %p1439_p6 = por %p1438_p13, %p1437_p4 }
  0x5b   : > { %p1440_p10 = pnand %p1439_p6, %p1433_p7 }
  0x5d   : > { %1443 = shalt.err (!%p1440_p10)
}
  0x5e   : > { %1228 = dma.hbm_to_vmem [thread:$0]  (!%p1697_p11), %s1693_s16, 64, %s1695_s17, %s242_s19  }
  0x5f   : > { %261 = sbr.rel (%p1600_p8) target bundleno = 593 (0x251), region = 44  ;;  %s1729_s20 = sand.u32 (!%p1600_p8), 1, %s1506_s22  }
  0x60   : > { %s1089_s9 = sshll.u32 (!%p1600_p8), %s1729_s20, 2  ;;  %s264_s13 = scalar_lea.sflag (!%p1600_p8), [#allocation3], %s1729_s20 }
  0x61   : > { %s1733_s10 = scalar_lea.vmem (!%p1600_p8), [#allocation2], %s1089_s9  ;;  %p1831_p4 = scmp.ne.s32.totalorder (!%p1600_p8), %s1824_s27, 0 }
  0x66   : > { %1489 = dma.done.wait (%p1831_p4), %s264_s13, 64  }
  0x67   : > { %1491 = vsyncadd (%p1831_p4), %s264_s13, 4294967232  ;;  %p1832_p7 = scmp.eq.s32.totalorder %s1581_s25, 0 }
  0x69   : > { %1493 = dma.done.wait (%p1832_p7), [#allocation6], 8192   ;;  %p1833_p8 = pmov %p1832_p7 }
  0x6a   : > { %v1523_v0 = vmov 0   ;;  %v1278_v1 = vld [vmem:[#allocation5 + $0x4] ss:$16 sps:$4 sm:$0xff]   ;;  %v1280_v2 = vld [vmem:[#allocation5 + $0xc] ss:$16 sps:$4 sm:$0xff]   ;;  %p307_p11 = scmp.lt.s32.totalorder %s1581_s25, 1  ;;  %v315_v18 = vlaneseq }
  0x6b   : > { %1495 = vsyncadd (%p1833_p8), [#allocation6], 4294959104  ;;  %567 = vmatprep.mubr.bf16.mxu0 %v1523_v0  ;;  %608 = vmatprep.mubr.bf16.mxu1 %v1523_v0  ;;  %v1282_v3 = vld [vmem:[#allocation5] ss:$16 sps:$4 sm:$0xff]   ;;  %v1283_v4 = vld [vmem:[#allocation5 + $0x8] ss:$16 sps:$4 sm:$0xff]  }
  0x6c   : > { %535 = vmatprep.subr.bf16.mxu0 %v1278_v1  ;;  %576 = vmatprep.subr.bf16.mxu1 %v1280_v2  ;;  %v1284_v5 = vld [vmem:[#allocation5 + $0x24] ss:$16 sps:$4 sm:$0xff]   ;;  %v1286_v6 = vld [vmem:[#allocation5 + $0x2c] ss:$16 sps:$4 sm:$0xff]   ;;  %v1288_v7 = vld [vmem:[#allocation5 + $0x20] ss:$16 sps:$4 sm:$0xff]  }
  0x6d   : > { %536 = vmatpush1.bf16.msra.mxu0 %v1282_v3  ;;  %577 = vmatpush1.bf16.msra.mxu1 %v1283_v4  ;;  %v1289_v8 = vld [vmem:[#allocation5 + $0x28] ss:$16 sps:$4 sm:$0xff]   ;;  %v1290_v9 = vld [vmem:[#allocation5 + $0x44] ss:$16 sps:$4 sm:$0xff]   ;;  %v1292_v10 = vld [vmem:[#allocation5 + $0x4c] ss:$16 sps:$4 sm:$0xff]  }
  0x6e   : > { %537 = vmatprep.subr.bf16.mxu0 %v1284_v5  ;;  %578 = vmatprep.subr.bf16.mxu1 %v1286_v6  ;;  %v1294_v11 = vld [vmem:[#allocation5 + $0x40] ss:$16 sps:$4 sm:$0xff]   ;;  %v1295_v12 = vld [vmem:[#allocation5 + $0x48] ss:$16 sps:$4 sm:$0xff]   ;;  %v1296_v13 = vld [vmem:[#allocation5 + $0x64] ss:$16 sps:$4 sm:$0xff]  }
  0x6f   : > { %v1298_v14 = vld [vmem:[#allocation5 + $0x6c] ss:$16 sps:$4 sm:$0xff]   ;;  %v1300_v15 = vld [vmem:[#allocation5 + $0x60] ss:$16 sps:$4 sm:$0xff]   ;;  %v1301_v16 = vld [vmem:[#allocation5 + $0x68] ss:$16 sps:$4 sm:$0xff]  }
  0x70   : > { %v1302_v17 = vld [vmem:[#allocation5 + $0x84] ss:$16 sps:$4 sm:$0xff]   ;;  %v1304_v19 = vld [vmem:[#allocation5 + $0x8c] ss:$16 sps:$4 sm:$0xff]   ;;  %s308_s27 = scalar_select %p307_p11, %s1581_s25, 1  ;;  %v1745_v23 = vshrl.u32 %v315_v18, 7 }
  0x71   : > { %538 = vmatpush1.bf16.msra.mxu0 %v1288_v7  ;;  %579 = vmatpush1.bf16.msra.mxu1 %v1289_v8  ;;  %v1306_v20 = vld [vmem:[#allocation5 + $0x80] ss:$16 sps:$4 sm:$0xff]   ;;  %v1307_v21 = vld [vmem:[#allocation5 + $0x88] ss:$16 sps:$4 sm:$0xff]   ;;  %v1308_v22 = vld [vmem:[#allocation5 + $0xa4] ss:$16 sps:$4 sm:$0xff]  }
  0x72   : > { %539 = vmatprep.subr.bf16.mxu0 %v1290_v9  ;;  %580 = vmatprep.subr.bf16.mxu1 %v1292_v10  ;;  %v1310_v24 = vld [vmem:[#allocation5 + $0xac] ss:$16 sps:$4 sm:$0xff]   ;;  %s309_s17 = scalar_lea.vmem %s1814_s0, %s308_s27  ;;  %v1312_v25 = vld [vmem:[#allocation5 + $0xa0] ss:$16 sps:$4 sm:$0xff]   ;;  %v1313_v26 = vld [vmem:[#allocation5 + $0xa8] ss:$16 sps:$4 sm:$0xff]  }
  0x73   : > { %v1314_v27 = vld [vmem:[#allocation5 + $0xc4] ss:$16 sps:$4 sm:$0xff]   ;;  %v317_v28 = vsub.s32 0, %v1745_v23  ;;  %v1316_v29 = vld [vmem:[#allocation5 + $0xcc] ss:$16 sps:$4 sm:$0xff]   ;;  %s1092_s14 = sshll.u32 %s1729_s20, 3 }
  0x74   : > { %v311_v30 = vld [vmem:[%s309_s17] sm:$0x1]  ;;  %v313_v31 = vld [vmem:[%s1733_s10] sm:$0xf]  ;;  %v1320_v36 = vld [vmem:[#allocation5 + $0xe4] ss:$16 sps:$4 sm:$0xff]  }
  0x75   : > { %540 = vmatpush1.bf16.msra.mxu0 %v1294_v11  ;;  %581 = vmatpush1.bf16.msra.mxu1 %v1295_v12  ;;  %v1318_v32 = vld [vmem:[#allocation5 + $0xc0] ss:$16 sps:$4 sm:$0xff]   ;;  %v312_v33 = vunpack.c.l.bf16 %v311_v30  ;;  %v1319_v34 = vld [vmem:[#allocation5 + $0xc8] ss:$16 sps:$4 sm:$0xff]   ;;  %v314_v35 = vunpack.c.l.bf16 %v313_v31  ;;  %v1322_v38 = vld [vmem:[#allocation5 + $0xec] ss:$16 sps:$4 sm:$0xff]  }
  0x76   : > { %541 = vmatprep.subr.bf16.mxu0 %v1296_v13  ;;  %582 = vmatprep.subr.bf16.mxu1 %v1298_v14  ;;  %v1324_v39 = vld [vmem:[#allocation5 + $0xe0] ss:$16 sps:$4 sm:$0xff]   ;;  %v1325_v40 = vld [vmem:[#allocation5 + $0xe8] ss:$16 sps:$4 sm:$0xff]   ;;  %v365_v11 = vsub.s32 2, %v1745_v23  ;;  %v361_v13 = vsub.s32 1, %v1745_v23 }
  0x77   : > { %v318_v37 = vrot.slane %v312_v33, %v317_v28  ;;  %v1326_v42 = vld [vmem:[#allocation7 + $0x40] sm:$0xff]   ;;  %v1330_v47 = vld [vmem:[#allocation7 + $0x48] sm:$0xff]   ;;  %v1334_v51 = vld [vmem:[#allocation7 + $0x50] sm:$0xff]   ;;  %v369_v14 = vsub.s32 3, %v1745_v23  ;;  %s1159_s7 = sshll.u32 %s1581_s25, 7  ;;  %s306_s30 = scalar_lea.vmem [#allocation8], %s1092_s14 }
  0x78   : > { %v1327_v43 = vld [vmem:[#allocation7 + $0xc0] sm:$0xff]   ;;  %v1331_v48 = vld [vmem:[#allocation7 + $0xc8] sm:$0xff]   ;;  %v1335_v52 = vld [vmem:[#allocation7 + $0xd0] sm:$0xff]   ;;  %s983_s9 = sshll.u32 %s306_s30, 4  ;;  %s1770_s27 = scalar_lea.hbm %s1820_s6, %s1159_s7  ;;  %s1772_s9 = int_to_ptr.vmem [resolvable:$true] %s983_s9 }
  0x79   : > { %542 = vmatpush1.bf16.msra.mxu0 %v1300_v15  ;;  %583 = vmatpush1.bf16.msra.mxu1 %v1301_v16  ;;  %v319_v41 = vmul.f32 %v318_v37, %v314_v35  ;;  %v1328_v44 = vld [vmem:[#allocation7] sm:$0xff]   ;;  %v1332_v49 = vld [vmem:[#allocation7 + $0x8] sm:$0xff]   ;;  %v1336_v53 = vld [vmem:[#allocation7 + $0x10] sm:$0xff]   ;;  %s970_s29 = scalar_lea.sflag [#allocation4], %s1729_s20  ;;  %s1444_s16 = scalar_lea.vmem %s1772_s9, 128 }
  0x7a   : > { %543 = vmatprep.subr.bf16.mxu0 %v1302_v17  ;;  %584 = vmatprep.subr.bf16.mxu1 %v1304_v19  ;;  %v1329_v46 = vld [vmem:[#allocation7 + $0x80] sm:$0xff]   ;;  %v1333_v50 = vld [vmem:[#allocation7 + $0x88] sm:$0xff]   ;;  %v1337_v54 = vld [vmem:[#allocation7 + $0x90] sm:$0xff]   ;;  %p1445_p0 = scmp.ne.s32.totalorder %s1772_s9, %s1444_s16  ;;  %p1834_p1 = scmp.ne.s32.totalorder %s1829_s12, 0 }
  0x7b   : > { %v320_v45 = vpack.c.bf16 %v319_v41, %v319_v41  ;;  %v1338_v55 = vld [vmem:[#allocation7 + $0x58] sm:$0xff]   ;;  %v1342_v59 = vld [vmem:[#allocation7 + $0x60] sm:$0xff]   ;;  %v1346_v63 = vld [vmem:[#allocation7 + $0x68] sm:$0xff]   ;;  %s1524_s25 = smov [#allocation8]  }
  0x7c   : > { %v1339_v56 = vld [vmem:[#allocation7 + $0xd8] sm:$0xff]   ;;  %v1343_v60 = vld [vmem:[#allocation7 + $0xe0] sm:$0xff]   ;;  %v1347_v0 = vld [vmem:[#allocation7 + $0xe8] sm:$0xff]   ;;  %p1446_p3 = pnand %p1445_p0, %p1834_p1  ;;  %s1448_s17 = sshll.u32 %s1524_s25, 4  ;;  %s1449_s17 = int_to_ptr.vmem [resolvable:$false] %s1448_s17 }
  0x7d   : > { %544 = vmatpush1.bf16.msra.mxu0 %v1306_v20  ;;  %585 = vmatpush1.bf16.msra.mxu1 %v1307_v21  ;;  %v1340_v57 = vld [vmem:[#allocation7 + $0x18] sm:$0xff]   ;;  %v1344_v61 = vld [vmem:[#allocation7 + $0x20] sm:$0xff]   ;;  %v1348_v1 = vld [vmem:[#allocation7 + $0x28] sm:$0xff]   ;;  %s1450_s18 = scalar_lea.vmem %s1449_s17, 256  ;;  %p1451_p9 = scmp.lt.s32.totalorder %s1772_s9, %s1449_s17 }
  0x7e   : > { %545 = vmatprep.subr.bf16.mxu0 %v1308_v22  ;;  %586 = vmatprep.subr.bf16.mxu1 %v1310_v24  ;;  %v1341_v58 = vld [vmem:[#allocation7 + $0x98] sm:$0xff]   ;;  %v1345_v62 = vld [vmem:[#allocation7 + $0xa0] sm:$0xff]   ;;  %v1349_v2 = vld [vmem:[#allocation7 + $0xa8] sm:$0xff]   ;;  %p1447_p5 = pneg %p1446_p3  ;;  %p1452_p12 = scmp.lt.s32.totalorder %s1450_s18, %s1444_s16 }
  0x7f   : > { %v1350_v3 = vld [vmem:[#allocation7 + $0x70] sm:$0xff]   ;;  %v1354_v7 = vld [vmem:[#allocation7 + $0x78] sm:$0xff]  }
  0x80   : > { %v1351_v4 = vld [vmem:[#allocation7 + $0xf0] sm:$0xff]   ;;  %v1355_v8 = vld [vmem:[#allocation7 + $0xf8] sm:$0xff]   ;;  %p1453_p2 = por %p1452_p12, %p1451_p9 }
  0x81   : > { %546 = vmatpush1.bf16.msra.mxu0 %v1312_v25  ;;  %587 = vmatpush1.bf16.msra.mxu1 %v1313_v26  ;;  %v1352_v5 = vld [vmem:[#allocation7 + $0x30] sm:$0xff]   ;;  %v1356_v9 = vld [vmem:[#allocation7 + $0x38] sm:$0xff]  }
  0x82   : > { %547 = vmatprep.subr.bf16.mxu0 %v1314_v27  ;;  %588 = vmatprep.subr.bf16.mxu1 %v1316_v29  ;;  %v1353_v6 = vld [vmem:[#allocation7 + $0xb0] sm:$0xff]   ;;  %v1357_v10 = vld [vmem:[#allocation7 + $0xb8] sm:$0xff]   ;;  %p1454_p13 = pnand %p1453_p2, %p1447_p5 }
  0x83   : > { %v353_v12 = vld [vmem:[%s1817_s3] sm:$0xf] }
  0x84   : > { %v358_v15 = vrot.slane %v353_v12, %v317_v28  ;;  %v366_v16 = vrot.slane %v353_v12, %v365_v11  ;;  %v362_v17 = vrot.slane %v353_v12, %v361_v13  ;;  %v370_v18 = vrot.slane %v353_v12, %v369_v14  ;;  %v1125_v41 = vld [vmem:[%s1819_s5] ss:$0 sm:$0xff] }
  0x85   : > { %548 = vmatpush1.bf16.msra.mxu0 %v1318_v32  ;;  %589 = vmatpush1.bf16.msra.mxu1 %v1319_v34 }
  0x86   : > { %549 = vmatprep.subr.bf16.mxu0 %v1320_v36  ;;  %590 = vmatprep.subr.bf16.mxu1 %v1322_v38 }
  0x89   : > { %550 = vmatpush1.bf16.msra.mxu0 %v1324_v39  ;;  %591 = vmatpush1.bf16.msra.mxu1 %v1325_v40 }
  0x8a   : > { %1162 = vmatprep.subr.bf16.mxu0 %v1326_v42  ;;  %1184 = vmatprep.subr.bf16.mxu1 %v1327_v43 }
  0x8c   : > { %568 = vmatmul.mubr.bf16.vlgmr.msra.gmra.mrb[0].mxu0 %v320_v45  ;;  %609 = vmatmul.mubr.bf16.vlgmr.msra.gmra.mrb[0].mxu1 %v320_v45 }
  0x8d   : > { %1163 = vmatpush3.bf16.msra.mxu0 %v1328_v44  ;;  %1185 = vmatpush3.bf16.msra.mxu1 %v1329_v46 }
  0x8e   : > { %1164 = vmatprep.subr.bf16.mxu0 %v1330_v47  ;;  %1186 = vmatprep.subr.bf16.mxu1 %v1331_v48 }
  0x91   : > { %1165 = vmatpush3.bf16.msra.mxu0 %v1332_v49  ;;  %1187 = vmatpush3.bf16.msra.mxu1 %v1333_v50 }
  0x92   : > { %1166 = vmatprep.subr.bf16.mxu0 %v1334_v51  ;;  %1188 = vmatprep.subr.bf16.mxu1 %v1335_v52 }
  0x95   : > { %1167 = vmatpush3.bf16.msra.mxu0 %v1336_v53  ;;  %1189 = vmatpush3.bf16.msra.mxu1 %v1337_v54 }
  0x96   : > { %1168 = vmatprep.subr.bf16.mxu0 %v1338_v55  ;;  %1190 = vmatprep.subr.bf16.mxu1 %v1339_v56 }
  0x99   : > { %1169 = vmatpush3.bf16.msra.mxu0 %v1340_v57  ;;  %1191 = vmatpush3.bf16.msra.mxu1 %v1341_v58 }
  0x9a   : > { %1170 = vmatprep.subr.bf16.mxu0 %v1342_v59  ;;  %1192 = vmatprep.subr.bf16.mxu1 %v1343_v60 }
  0x9d   : > { %1171 = vmatpush3.bf16.msra.mxu0 %v1344_v61  ;;  %1193 = vmatpush3.bf16.msra.mxu1 %v1345_v62 }
  0x9e   : > { %1172 = vmatprep.subr.bf16.mxu0 %v1346_v63  ;;  %1194 = vmatprep.subr.bf16.mxu1 %v1347_v0 }
  0xa1   : > { %1173 = vmatpush3.bf16.msra.mxu0 %v1348_v1  ;;  %1195 = vmatpush3.bf16.msra.mxu1 %v1349_v2 }
  0xa2   : > { %1174 = vmatprep.subr.bf16.mxu0 %v1350_v3  ;;  %1196 = vmatprep.subr.bf16.mxu1 %v1351_v4 }
  0xa5   : > { %1175 = vmatpush3.bf16.msra.mxu0 %v1352_v5  ;;  %1197 = vmatpush3.bf16.msra.mxu1 %v1353_v6 }
  0xa6   : > { %1176 = vmatprep.subr.bf16.mxu0 %v1354_v7  ;;  %1198 = vmatprep.subr.bf16.mxu1 %v1355_v8 }
  0xa9   : > { %1177 = vmatpush3.bf16.msra.mxu0 %v1356_v9  ;;  %1199 = vmatpush3.bf16.msra.mxu1 %v1357_v10 }
 0x15f   : > { %v569_v19 = vpop.f32.mrb[0].mxu0  ;;  %v610_v20 = vpop.f32.mrb[0].mxu1 }
 0x160   : > { %v570_v21 = vadd.f32 %v569_v19, %v358_v15  ;;  %v611_v22 = vadd.f32 %v610_v20, %v366_v16  ;;  %v571_v24 = vpop.f32.mrb[1].mxu0  ;;  %v612_v25 = vpop.f32.mrb[1].mxu1 }
 0x161   : > { %v572_v26 = vadd.f32 %v571_v24, %v362_v17  ;;  %v613_v27 = vadd.f32 %v612_v25, %v370_v18  ;;  %v573_v29 = vpop.f32.mrb[2].mxu0  ;;  %v614_v30 = vpop.f32.mrb[2].mxu1 }
 0x162   : > { %v617_v31 = vmax.f32 %v570_v21, 0.0  ;;  %v619_v32 = vmax.f32 %v611_v22, 0.0  ;;  %v574_v33 = vpop.f32.mrb[3].mxu0  ;;  %v615_v34 = vpop.f32.mrb[3].mxu1 }
 0x163   : > { %v618_v23 = vmax.f32 %v572_v26, 0.0  ;;  %v620_v28 = vmax.f32 %v613_v27, 0.0 }
 0x164   : > { %v623_v35 = vpack.c.bf16 %v619_v32, %v619_v32  ;;  %v621_v38 = vpack.c.bf16 %v617_v31, %v617_v31 }
 0x165   : > { %v622_v36 = vpack.c.bf16 %v618_v23, %v618_v23  ;;  %v624_v37 = vpack.c.bf16 %v620_v28, %v620_v28 }
 0x167   : > { %920 = vmatprep.mubr.bf16.mxu0 %v622_v36  ;;  %960 = vmatprep.mubr.bf16.mxu1 %v624_v37 }
 0x168   : > { %921 = vmatmul.mubr.bf16.vlgmr.msra.gmra.mrb[4].mxu0 %v621_v38  ;;  %961 = vmatmul.mubr.bf16.vlgmr.msra.gmra.mrb[4].mxu1 %v623_v35 }
 0x23b   : > { %v1178_v39 = vpop.f32.mrb[4].mxu0  ;;  %v1200_v40 = vpop.f32.mrb[4].mxu1 }
 0x23c   : > { %v1179_v42 = vpop.f32.mrb[5].mxu0  ;;  %v1201_v43 = vpop.f32.mrb[5].mxu1 }
 0x23d   : > { %v1180_v44 = vadd.f32 %v1179_v42, %v1178_v39  ;;  %v1202_v45 = vadd.f32 %v1201_v43, %v1200_v40  ;;  %v1181_v46 = vpop.f32.mrb[6].mxu0  ;;  %v1203_v47 = vpop.f32.mrb[6].mxu1 }
 0x23e   : > { %v1182_v48 = vpop.f32.mrb[7].mxu0  ;;  %v1204_v49 = vpop.f32.mrb[7].mxu1 }
 0x23f   : > { %v923_v50 = vadd.f32 %v1180_v44, %v1125_v41 }
 0x241   : > { %v963_v51 = vadd.f32 %v1202_v45, %v923_v50 }
 0x243   : > { %968 = vst [vmem:[%s306_s30] sm:$0xff] %v963_v51 }
 0x244   : > { %1457 = shalt.err (!%p1454_p13)
}
 0x245   : > { %s1458_s20 = scalar_lea.hbm %s1770_s27, 128  ;;  %s1462_s8 = scalar_lea.hbm %s1820_s6, 256 }
 0x246   : > { %p1459_p6 = scmp.ne.s32.totalorder %s1770_s27, %s1458_s20  ;;  %p1463_p7 = scmp.lt.u32.totalorder %s1770_s27, %s1820_s6 }
 0x247   : > { %p1464_p8 = scmp.lt.u32.totalorder %s1462_s8, %s1458_s20  ;;  %p1466_p0 = scmp.lt.u32.totalorder %s1458_s20, %s1770_s27 }
 0x248   : > { %p1460_p10 = pnand %p1459_p6, %p1834_p1 }
 0x249   : > { %p1465_p11 = por %p1464_p8, %p1463_p7 }
 0x24a   : > { %p1461_p4 = pneg %p1460_p10 }
 0x24b   : > { %p1467_p3 = por %p1466_p0, %p1465_p11 }
 0x24d   : > { %p1468_p5 = pnand %p1467_p3, %p1461_p4 }
 0x24f   : > { %1471 = shalt.err (!%p1468_p5)
}
 0x250   : > { %1216 = dma.vmem_to_hbm [thread:$0]  (%p1834_p1), %s1772_s9, 128, %s1770_s27, %s970_s29  }
 0x251 PF: > { %s995_s30 = sand.u32 1, %s1502_s21   ;;  %p1835_p9 = scmp.ne.s32.totalorder %s1825_s28, 0 }
 0x252   : > { %p1836_p12 = scmp.ge.s32.totalorder %s1514_s24, 2  ;;  %s996_s13 = scalar_lea.sflag [#allocation4], %s995_s30 }
 0x254   : > { %p1230_p2 = pnand %p1836_p12, %p1835_p9 }
 0x256   : > { %1497 = dma.done.wait (!%p1230_p2), %s996_s13, 128  }
 0x257   : > { %1499 = vsyncadd (!%p1230_p2), %s996_s13, 4294967168  ;;  %p20_p13 = scmp.ge.s32.totalorder %s1670_s26, 4   ;;  %s1837_s21 = smov %s1506_s22 }
 0x258   : > { %s1838_s22 = smov %s1510_s23  ;;  %s1839_s23 = smov %s1679_s11 }
 0x259   : > { %s1840_s24 = smov %s1670_s26  ;;  %22 = sbr.rel (!%p20_p13) target bundleno = 6 (0x6), region = 100 }
 0x260   :  { %1001 = vsyncpa [#allocation3], 1 }
 0x261   :  { %1003 = vsyncpa [#allocation3 + $0x1], 1 }
 0x262   :  { %1004 = vsyncpa [#allocation6], 1 }
 0x263   :  { %1005 = vsyncpa [#allocation4], 1 }
 0x264   :  { %1007 = vsyncpa [#allocation4 + $0x1], 1 }

</bundles_post_ra>
